<compile_context>
chip_gen: v5e
topology: v5e:2x2
jax: 0.10.0
libtpu: 0.0.40
codegen_flags: <defaults>
</compile_context>

<pallas_src>
import functools
import math

import jax
import jax.numpy as jnp
from jax import lax
from jax.experimental import pallas as pl
from jax.experimental.pallas import tpu as pltpu


def _accon_row_kernel(f_blk_ref, f_all_t_ref, lab_col_ref, lab_row_ref, o_ref, *,
                      block_rows, max_internal, temperature, base_temperature,
                      tau):
    i = pl.program_id(0)

    f_blk = f_blk_ref[...]                       # (block_rows, D) bf16
    f_all_t = f_all_t_ref[...]                   # (D, N)          bf16
    lab_c = lab_col_ref[...]                     # (block_rows, 1) f32
    lab_r = lab_row_ref[...]                     # (1, N)          f32
    n = f_all_t.shape[1]

    # --- MXU: (block_rows, D) @ (D, N), bf16 operands, f32 accumulation -----
    cos_theta = jnp.dot(f_blk, f_all_t, preferred_element_type=jnp.float32)
    cos_theta = jnp.clip(cos_theta, -1.0, 1.0)
    sin_theta = jnp.sqrt(1.0 - cos_theta * cos_theta + tau)

    # --- rank-1 trig reconstruction: O(N) transcendentals, not O(N^2) -------
    #   phi = (1 - (l_i - l_j)/max_internal)*pi = pi - (a_i - a_j)
    #   cos(phi) = -(c_i c_j + s_i s_j),  sin(phi) = s_i c_j - c_i s_j
    scale = jnp.float32(math.pi / max_internal)
    a_c = lab_c * scale                          # (block_rows, 1)
    a_r = lab_r * scale                          # (1, N)
    c_c, s_c = jnp.cos(a_c), jnp.sin(a_c)
    c_r, s_r = jnp.cos(a_r), jnp.sin(a_r)
    cos_phi = -(c_c * c_r + s_c * s_r)           # (block_rows, N)
    abs_sin_phi = jnp.abs(s_c * c_r - c_c * s_r)

    inv_t = jnp.float32(1.0 / temperature)
    logits = cos_theta * inv_t
    logits_max = jnp.max(logits, axis=1, keepdims=True)
    logits = logits - logits_max                 # forward only: detach() is a no-op

    # --- boolean masks, built per block (no full NxN iotas) -----------------
    row_ids = i * block_rows + lax.broadcasted_iota(jnp.int32, (block_rows, 1), 0)
    col_ids = lax.broadcasted_iota(jnp.int32, (1, n), 1)
    offdiag = row_ids != col_ids                 # (block_rows, N) bool
    pos_mask = jnp.logical_and(lab_c == lab_r, offdiag)

    neg_logit = (cos_theta * cos_phi - sin_theta * abs_sin_phi) * inv_t
    # neg_logit[mask == 1] = logits[mask == 1]
    neg_logit = jnp.where(pos_mask, logits, neg_logit)

    exp_logits = jnp.where(offdiag, jnp.exp(neg_logit), 0.0)
    log_prob = logits - jnp.log(jnp.sum(exp_logits, axis=1, keepdims=True))

    pos_sum = jnp.sum(jnp.where(pos_mask, log_prob, 0.0), axis=1, keepdims=True)
    mask_sum = jnp.sum(pos_mask.astype(jnp.float32), axis=1, keepdims=True)
    mean_log_prob_pos = (pos_sum + tau) / (mask_sum + tau)

    o_ref[...] = (-(temperature / base_temperature)) * mean_log_prob_pos


def _pick_block_rows(n):
    """Largest row block that divides N, respects bf16 tiling (mult of 16),
    and keeps ~10 live (block_rows, N) f32 slabs under ~40 MiB."""
    budget_rows = max(16, (1 << 20) // max(n, 1))   # 10*4B*block_rows*N <= ~40 MiB
    for cand in (512, 256, 128, 64, 32, 16):
        if cand <= budget_rows and n % cand == 0:
            return cand
    # Fallback: single block over all rows (small or oddly-sized N).
    return n


def _vmem_limit_bytes(block_rows, n, d):
    slab = block_rows * n * 4                        # one (block_rows, N) f32 temp
    io = 2 * (block_rows * d * 2 + n * d * 2         # double-buffered bf16 features
              + (block_rows + n) * 4                 # label column / row
              + block_rows * 4)                      # per-row loss output
    est = int((10 * slab + io) * 1.3)                # ~10 live slabs + 30% headroom
    return max(32 * 1024 * 1024, min(est, 64 * 1024 * 1024))


def accon_loss(features, labels, *, max_internal=100.0, temperature=1.0,
               base_temperature=1.0, tau=1e-6):
    """features: [bsz, n_views, ...]; labels: [bsz, 1]. Returns scalar loss."""
    bsz = features.shape[0]
    n_views = features.shape[1]
    feats = features.reshape(bsz, n_views, -1).astype(jnp.float32)
    d = feats.shape[-1]
    n = bsz * n_views

    # contrast_feature = cat(unbind(features, dim=1), dim=0): view-major stacking.
    contrast = jnp.transpose(feats, (1, 0, 2)).reshape(n, d)
    contrast_bf16 = contrast.astype(jnp.bfloat16)    # (N, D) MXU lhs (row-tiled)
    contrast_t = contrast_bf16.T                     # (D, N) MXU rhs (resident)

    labels_f = labels.reshape(bsz, 1).astype(jnp.float32)
    lab_col = jnp.tile(labels_f, (n_views, 1))       # (N, 1)
    lab_row = lab_col.reshape(1, n)                  # (1, N)

    block_rows = _pick_block_rows(n)
    grid = (n // block_rows,)

    kernel = functools.partial(
        _accon_row_kernel,
        block_rows=block_rows,
        max_internal=float(max_internal),
        temperature=float(temperature),
        base_temperature=float(base_temperature),
        tau=float(tau),
    )

    per_row = pl.pallas_call(
        kernel,
        out_shape=jax.ShapeDtypeStruct((n, 1), jnp.float32),
        grid=grid,
        in_specs=[
            pl.BlockSpec((block_rows, d), lambda i: (i, 0)),   # anchor rows (bf16)
            pl.BlockSpec((d, n), lambda i: (0, 0)),            # full contrast^T (bf16)
            pl.BlockSpec((block_rows, 1), lambda i: (i, 0)),   # labels column slice
            pl.BlockSpec((1, n), lambda i: (0, 0)),            # labels row
        ],
        out_specs=pl.BlockSpec((block_rows, 1), lambda i: (i, 0)),
        compiler_params=pltpu.CompilerParams(
            dimension_semantics=("parallel",),
            vmem_limit_bytes=_vmem_limit_bytes(block_rows, n, d),
        ),
    )(contrast_bf16, contrast_t, lab_col, lab_row)

    # loss.view(anchor_count, batch_size).mean() == mean over all N rows.
    return jnp.sum(per_row) / n


def _accon_loss_ref(features, labels, *, max_internal=100.0, temperature=1.0,
                    base_temperature=1.0, tau=1e-6):
    """Pure-JAX (f32) reference mirroring the PyTorch forward exactly."""
    bsz = features.shape[0]
    n_views = features.shape[1]
    feats = features.reshape(bsz, n_views, -1)
    contrast = jnp.concatenate([feats[:, v, :] for v in range(n_views)], axis=0)
    contrast = contrast.astype(jnp.float32)
    n = bsz * n_views
    labels_f = labels.reshape(bsz, 1).astype(jnp.float32)
    dist = labels_f - labels_f.T
    mask = (labels_f == labels_f.T).astype(jnp.float32)
    dist = jnp.tile(dist, (n_views, n_views))
    mask = jnp.tile(mask, (n_views, n_views))
    phi = (1.0 - dist / max_internal) * jnp.pi
    cos_phi, sin_phi = jnp.cos(phi), jnp.sin(phi)
    cos_theta = jnp.clip(contrast @ contrast.T, -1.0, 1.0)
    sin_theta = jnp.sqrt(1.0 - cos_theta ** 2 + tau)
    logits = cos_theta / temperature
    logits = logits - jnp.max(logits, axis=1, keepdims=True)
    logits_mask = 1.0 - jnp.eye(n, dtype=jnp.float32)
    mask = mask * logits_mask
    neg_logit = (cos_theta * cos_phi - sin_theta * jnp.abs(sin_phi)) / temperature
    neg_logit = jnp.where(mask == 1.0, logits, neg_logit)
    exp_logits = jnp.exp(neg_logit) * logits_mask
    log_prob = logits - jnp.log(jnp.sum(exp_logits, axis=1, keepdims=True))
    mean_log_prob_pos = (jnp.sum(mask * log_prob, axis=1) + tau) / (jnp.sum(mask, axis=1) + tau)
    loss = -(temperature / base_temperature) * mean_log_prob_pos
    return jnp.mean(loss.reshape(n_views, bsz))


if __name__ == "__main__":
    key = jax.random.PRNGKey(0)
    k_feat, k_lab = jax.random.split(key)

    bsz, n_views, d = 8, 2, 32
    features = jax.random.normal(k_feat, (bsz, n_views, d), dtype=jnp.float32)
    # L2-normalize per view (standard for SupCon-style features).
    features = features / (jnp.linalg.norm(features, axis=-1, keepdims=True) + 1e-12)
    labels = jax.random.randint(k_lab, (bsz, 1), 0, 4).astype(jnp.float32)

    loss = jax.block_until_ready(accon_loss(features, labels))
    ref = jax.block_until_ready(_accon_loss_ref(features, labels))

    # bf16 MXU operands -> slightly looser tolerance vs the pure-f32 reference.
    assert jnp.allclose(loss, ref, rtol=2e-2, atol=2e-2), (loss, ref)

    print("KERNEL_OK")
</pallas_src>

<mosaic_0001>
module attributes {stable_mosaic.version = 11 : i64} {
  func.func @_accon_row_kernel(%arg0: i32, %arg1: memref<16x32xbf16, #tpu.memory_space<vmem>>, %arg2: memref<32x16xbf16, #tpu.memory_space<vmem>>, %arg3: memref<16x1xf32, #tpu.memory_space<vmem>>, %arg4: memref<1x16xf32, #tpu.memory_space<vmem>>, %arg5: memref<16x1xf32, #tpu.memory_space<vmem>>) attributes {dimension_semantics = [#tpu.dimension_semantics<parallel>], iteration_bounds = array<i64: 1>, scalar_prefetch = 0 : i64, scratch_operands = 0 : i64, tpu.core_type = #tpu.core_type<tc>, window_params = [{transform_indices = @transform_0, window_bounds = array<i64: 16, 32>}, {pipeline_mode = #tpu.pipeline_mode<synchronous>, transform_indices = @transform_1, window_bounds = array<i64: 32, 16>}, {transform_indices = @transform_2, window_bounds = array<i64: 16, 1>}, {pipeline_mode = #tpu.pipeline_mode<synchronous>, transform_indices = @transform_3, window_bounds = array<i64: 1, 16>}, {transform_indices = @transform_4, window_bounds = array<i64: 16, 1>}]} {
    %c0 = arith.constant 0 : index
    %c0_0 = arith.constant 0 : index
    %0 = vector.load %arg1[%c0, %c0_0] : memref<16x32xbf16, #tpu.memory_space<vmem>>, vector<16x32xbf16>
    %c0_1 = arith.constant 0 : index
    %c0_2 = arith.constant 0 : index
    %1 = vector.load %arg2[%c0_1, %c0_2] : memref<32x16xbf16, #tpu.memory_space<vmem>>, vector<32x16xbf16>
    %c0_3 = arith.constant 0 : index
    %c0_4 = arith.constant 0 : index
    %2 = vector.load %arg3[%c0_3, %c0_4] : memref<16x1xf32, #tpu.memory_space<vmem>>, vector<16x1xf32>
    %c0_5 = arith.constant 0 : index
    %c0_6 = arith.constant 0 : index
    %3 = vector.load %arg4[%c0_5, %c0_6] : memref<1x16xf32, #tpu.memory_space<vmem>>, vector<1x16xf32>
    %cst = arith.constant dense<0.000000e+00> : vector<16x16xf32>
    %4 = tpu.matmul %0, %1, %cst {dimension_numbers = #tpu.dot_dimension_numbers<[1], [0], [0], [1], [0, 0, 1, 1], [], []>} : vector<16x32xbf16>, vector<32x16xbf16>, vector<16x16xf32> -> vector<16x16xf32>
    %cst_7 = arith.constant -1.000000e+00 : f32
    %cst_8 = arith.constant 1.000000e+00 : f32
    %5 = vector.broadcast %cst_7 : f32 to vector<16x16xf32>
    %6 = arith.maximumf %5, %4 : vector<16x16xf32>
    %7 = vector.broadcast %cst_8 : f32 to vector<16x16xf32>
    %8 = arith.minimumf %7, %6 : vector<16x16xf32>
    %9 = arith.mulf %8, %8 : vector<16x16xf32>
    %cst_9 = arith.constant 1.000000e+00 : f32
    %10 = vector.broadcast %cst_9 : f32 to vector<16x16xf32>
    %11 = arith.subf %10, %9 : vector<16x16xf32>
    %cst_10 = arith.constant 9.99999997E-7 : f32
    %12 = vector.broadcast %cst_10 : f32 to vector<16x16xf32>
    %13 = arith.addf %11, %12 : vector<16x16xf32>
    %14 = math.sqrt %13 : vector<16x16xf32>
    %cst_11 = arith.constant 0.0314159282 : f32
    %15 = vector.broadcast %cst_11 : f32 to vector<16x1xf32>
    %16 = arith.mulf %2, %15 : vector<16x1xf32>
    %cst_12 = arith.constant 0.0314159282 : f32
    %17 = vector.broadcast %cst_12 : f32 to vector<1x16xf32>
    %18 = arith.mulf %3, %17 : vector<1x16xf32>
    %19 = math.cos %16 : vector<16x1xf32>
    %20 = math.sin %16 : vector<16x1xf32>
    %21 = math.cos %18 : vector<1x16xf32>
    %22 = math.sin %18 : vector<1x16xf32>
    %23 = vector.broadcast %19 : vector<16x1xf32> to vector<16x16xf32>
    %24 = vector.broadcast %21 : vector<1x16xf32> to vector<16x16xf32>
    %25 = arith.mulf %23, %24 : vector<16x16xf32>
    %26 = vector.broadcast %20 : vector<16x1xf32> to vector<16x16xf32>
    %27 = vector.broadcast %22 : vector<1x16xf32> to vector<16x16xf32>
    %28 = arith.mulf %26, %27 : vector<16x16xf32>
    %29 = arith.addf %25, %28 : vector<16x16xf32>
    %cst_13 = arith.constant 0.000000e+00 : f32
    %30 = vector.broadcast %cst_13 : f32 to vector<16x16xf32>
    %31 = arith.subf %30, %29 : vector<16x16xf32>
    %32 = vector.broadcast %20 : vector<16x1xf32> to vector<16x16xf32>
    %33 = vector.broadcast %21 : vector<1x16xf32> to vector<16x16xf32>
    %34 = arith.mulf %32, %33 : vector<16x16xf32>
    %35 = vector.broadcast %19 : vector<16x1xf32> to vector<16x16xf32>
    %36 = vector.broadcast %22 : vector<1x16xf32> to vector<16x16xf32>
    %37 = arith.mulf %35, %36 : vector<16x16xf32>
    %38 = arith.subf %34, %37 : vector<16x16xf32>
    %39 = math.absf %38 : vector<16x16xf32>
    %cst_14 = arith.constant 1.000000e+00 : f32
    %40 = vector.broadcast %cst_14 : f32 to vector<16x16xf32>
    %41 = arith.mulf %8, %40 : vector<16x16xf32>
    %cst_15 = arith.constant dense<0xFF800000> : vector<16xf32>
    %42 = vector.multi_reduction <maximumf>, %41, %cst_15 [1] : vector<16x16xf32> to vector<16xf32>
    %43 = vector.shape_cast %42 : vector<16xf32> to vector<16x1xf32>
    %44 = vector.broadcast %43 : vector<16x1xf32> to vector<16x16xf32>
    %45 = arith.subf %41, %44 : vector<16x16xf32>
    %c16_i32 = arith.constant 16 : i32
    %46 = arith.muli %arg0, %c16_i32 : i32
    %47 = tpu.iota {dimensions = array<i32: 0>} : vector<16x1xi32>
    %48 = vector.broadcast %46 : i32 to vector<16x1xi32>
    %49 = arith.addi %48, %47 : vector<16x1xi32>
    %50 = tpu.iota {dimensions = array<i32: 1>} : vector<1x16xi32>
    %51 = vector.broadcast %49 : vector<16x1xi32> to vector<16x16xi32>
    %52 = vector.broadcast %50 : vector<1x16xi32> to vector<16x16xi32>
    %53 = arith.cmpi ne, %51, %52 : vector<16x16xi32>
    %54 = vector.broadcast %2 : vector<16x1xf32> to vector<16x16xf32>
    %55 = vector.broadcast %3 : vector<1x16xf32> to vector<16x16xf32>
    %56 = arith.cmpf oeq, %54, %55 : vector<16x16xf32>
    %57 = arith.andi %56, %53 : vector<16x16xi1>
    %58 = arith.mulf %8, %31 : vector<16x16xf32>
    %59 = arith.mulf %14, %39 : vector<16x16xf32>
    %60 = arith.subf %58, %59 : vector<16x16xf32>
    %cst_16 = arith.constant 1.000000e+00 : f32
    %61 = vector.broadcast %cst_16 : f32 to vector<16x16xf32>
    %62 = arith.mulf %60, %61 : vector<16x16xf32>
    %63 = arith.select %57, %45, %62 : vector<16x16xi1>, vector<16x16xf32>
    %64 = math.exp %63 : vector<16x16xf32>
    %cst_17 = arith.constant 0.000000e+00 : f32
    %65 = vector.broadcast %cst_17 : f32 to vector<16x16xf32>
    %66 = arith.select %53, %64, %65 : vector<16x16xi1>, vector<16x16xf32>
    %cst_18 = arith.constant dense<0.000000e+00> : vector<16xf32>
    %67 = vector.multi_reduction <add>, %66, %cst_18 [1] : vector<16x16xf32> to vector<16xf32>
    %68 = vector.shape_cast %67 : vector<16xf32> to vector<16x1xf32>
    %69 = math.log %68 : vector<16x1xf32>
    %70 = vector.broadcast %69 : vector<16x1xf32> to vector<16x16xf32>
    %71 = arith.subf %45, %70 : vector<16x16xf32>
    %cst_19 = arith.constant 0.000000e+00 : f32
    %72 = vector.broadcast %cst_19 : f32 to vector<16x16xf32>
    %73 = arith.select %57, %71, %72 : vector<16x16xi1>, vector<16x16xf32>
    %cst_20 = arith.constant dense<0.000000e+00> : vector<16xf32>
    %74 = vector.multi_reduction <add>, %73, %cst_20 [1] : vector<16x16xf32> to vector<16xf32>
    %75 = vector.shape_cast %74 : vector<16xf32> to vector<16x1xf32>
    %76 = arith.extui %57 : vector<16x16xi1> to vector<16x16xi32>
    %77 = arith.sitofp %76 : vector<16x16xi32> to vector<16x16xf32>
    %cst_21 = arith.constant dense<0.000000e+00> : vector<16xf32>
    %78 = vector.multi_reduction <add>, %77, %cst_21 [1] : vector<16x16xf32> to vector<16xf32>
    %79 = vector.shape_cast %78 : vector<16xf32> to vector<16x1xf32>
    %cst_22 = arith.constant 9.99999997E-7 : f32
    %80 = vector.broadcast %cst_22 : f32 to vector<16x1xf32>
    %81 = arith.addf %75, %80 : vector<16x1xf32>
    %cst_23 = arith.constant 9.99999997E-7 : f32
    %82 = vector.broadcast %cst_23 : f32 to vector<16x1xf32>
    %83 = arith.addf %79, %82 : vector<16x1xf32>
    %84 = arith.divf %81, %83 : vector<16x1xf32>
    %cst_24 = arith.constant -1.000000e+00 : f32
    %85 = vector.broadcast %cst_24 : f32 to vector<16x1xf32>
    %86 = arith.mulf %85, %84 : vector<16x1xf32>
    %c0_25 = arith.constant 0 : index
    %c0_26 = arith.constant 0 : index
    %87 = vector.load %arg5[%c0_25, %c0_26] : memref<16x1xf32, #tpu.memory_space<vmem>>, vector<16x1xf32>
    tpu.vector_store %arg5[%c0_25, %c0_26], %86 {strides = array<i32>} : memref<16x1xf32, #tpu.memory_space<vmem>>, vector<16x1xf32>,
    return
  }
  func.func @transform_0(%arg0: i32) -> (i32, i32) {
    %c0_i32 = arith.constant 0 : i32
    %c0_i32_0 = arith.constant 0 : i32
    return %arg0, %c0_i32 : i32, i32
  }
  func.func @transform_1(%arg0: i32) -> (i32, i32) {
    %c0_i32 = arith.constant 0 : i32
    %c0_i32_0 = arith.constant 0 : i32
    %c0_i32_1 = arith.constant 0 : i32
    return %c0_i32, %c0_i32_0 : i32, i32
  }
  func.func @transform_2(%arg0: i32) -> (i32, i32) {
    %c0_i32 = arith.constant 0 : i32
    %c0_i32_0 = arith.constant 0 : i32
    return %arg0, %c0_i32 : i32, i32
  }
  func.func @transform_3(%arg0: i32) -> (i32, i32) {
    %c0_i32 = arith.constant 0 : i32
    %c0_i32_0 = arith.constant 0 : i32
    %c0_i32_1 = arith.constant 0 : i32
    return %c0_i32, %c0_i32_0 : i32, i32
  }
  func.func @transform_4(%arg0: i32) -> (i32, i32) {
    %c0_i32 = arith.constant 0 : i32
    %c0_i32_0 = arith.constant 0 : i32
    return %arg0, %c0_i32 : i32, i32
  }
}

</mosaic_0001>

<bundles_post_ra>
// kernel: tpu_custom_call.1
= control target key start
LH: loop header
LB: loop body
LE: loop exit
PB: predicated region body
PF: predicated region fallthrough
CT: control target
= control target key end

     0   :  { %v1257_v1 = vmov 0   ;;  %vm44_vm0 = vcmask 261120   ;;  %v1258_v29 = vmov 683565275   ;;  %v1259_v31 = vmov 2475754826   ;;  %s1647_s1 = inlined_call_operand.vmem [shape: bf16[32,16], index: 1, kind: input, shape index: {}]   ;;  %s1648_s2 = inlined_call_operand.vmem [shape: f32[16,1], index: 2, kind: input, shape index: {}]   ;;  %s1649_s0 = inlined_call_operand.vmem [shape: bf16[16,32], index: 0, kind: input, shape index: {}]   ;;  %s1650_s3 = inlined_call_operand.vmem [shape: f32[1,16], index: 3, kind: input, shape index: {}]   ;;  %s1651_s4 = inlined_call_operand.vmem [shape: f32[16,1], index: 4, kind: output, shape index: {}]  }
   0x1   :  { %v1229_v0 = vld [vmem:[%s1647_s1 + $0x8] sm:$0xff]  ;;  %1239 = vset.pattern.permute.xlu1 %v1257_v1  ;;  %1238 = vset.pattern.permute.xlu0 %v1257_v1  ;;  %v1298_v2 = vld [vmem:[%s1648_s2] sm:$0xff]  ;;  %v1260_v33 = vmov 2131351028   ;;  %v1261_v35 = vmov 2102212464  }
   0x2   :  { %v1303_v3 = vld [vmem:[%s1648_s2 + $0x8] sm:$0xff]  ;;  %54 = vmatpush.bf16.msra.mxu0 %v1229_v0  ;;  %v1228_v4 = vld [vmem:[%s1647_s1] sm:$0xff]  ;;  %v1309_v5 = vmul.f32 0.03141593, %v1298_v2  ;;  %v1262_v37 = vmov 920167782  }
   0x3   :  { %v1312_v6 = vmul.f32 0.03141593, %v1303_v3  ;;  %v1227_v9 = vld [vmem:[%s1649_s0] sm:$0xff]  ;;  %v1263_v46 = vmov 1326507024  }
   0x4   :  { %v99_v7 = vand.u32 2147483647, %v1309_v5  ;;  %v102_v8 = vand.u32 2139095040, %v1309_v5 }
   0x5   :  { %v253_v10 = vand.u32 2147483647, %v1312_v6  ;;  %v256_v11 = vand.u32 2139095040, %v1312_v6 }
   0x6   :  { %55 = vmatpush.bf16.msra.mxu0 %v1228_v4  ;;  %v103_v12 = vshrl.u32 %v102_v8, 23  ;;  %v106_v13 = vand.u32 8388607, %v99_v7 }
   0x7   :  { %v257_v14 = vshrl.u32 %v256_v11, 23  ;;  %v260_v18 = vand.u32 8388607, %v253_v10 }
   0x8   :  { %v1207_v15 = vadd.s32 4294967169, %v103_v12  ;;  %v107_v16 = vor.u32 8388608, %v106_v13 }
   0x9   :  { %1204 = vmatmul.msk.bf16.vlgmr.msra.gmra.mxu0 %vm44_vm0, %v1227_v9  ;;  %v1210_v17 = vadd.s32 4294967169, %v257_v14  ;;  %v261_v23 = vor.u32 8388608, %v260_v18 }
   0xa   :  { %v109_v19 = vadd.s32 1, %v1207_v15  ;;  %v1325_v22 = vshll.u32 %v107_v16, 8 }
   0xb   :  { %v263_v20 = vadd.s32 1, %v1210_v17  ;;  %v1337_v40 = vshll.u32 %v261_v23, 8 }
   0xc   :  { %vm110_vm1 = vcmp.gt.s32.totalorder %v109_v19, 0  ;;  %v148_v39 = vand.u32 65535, %v1325_v22  ;;  %v149_v44 = vshrl.u32 %v1325_v22, 16 }
   0xd   :  { %v111_v21 = vsel %vm110_vm1, %v109_v19, 0  ;;  %vm264_vm2 = vcmp.gt.s32.totalorder %v263_v20, 0 }
   0xe   :  { %v113_v24 = vand.u32 31, %v111_v21  ;;  %v265_v25 = vsel %vm264_vm2, %v263_v20, 0  ;;  %v1327_v26 = vshrl.u32 %v111_v21, 5 }
   0xf   :  { %v1329_v27 = vand.u32 31, %v265_v25  ;;  %v1357_v57 = vshrl.u32 %v265_v25, 5 }
  0x10   :  { %v114_v28 = vsub.s32 32, %v113_v24  ;;  %v116_v30 = vshll.u32 %v1258_v29, %v113_v24  ;;  %v119_v32 = vshll.u32 %v1259_v31, %v113_v24  ;;  %v122_v34 = vshll.u32 %v1260_v33, %v113_v24 }
  0x11   :  { %v125_v36 = vshll.u32 %v1261_v35, %v113_v24  ;;  %v128_v38 = vshll.u32 %v1262_v37, %v113_v24  ;;  %vm131_vm3 = vcmp.lt.s32.totalorder %v1327_v26, 1  ;;  %vm134_vm4 = vcmp.lt.s32.totalorder %v1327_v26, 4 }
  0x12   :  { %v117_v41 = vshrl.u32 %v1259_v31, %v114_v28  ;;  %v120_v42 = vshrl.u32 %v1260_v33, %v114_v28  ;;  %v123_v43 = vshrl.u32 %v1261_v35, %v114_v28  ;;  %v126_v45 = vshrl.u32 %v1262_v37, %v114_v28 }
  0x13   :  { %v129_v47 = vshrl.u32 %v1263_v46, %v114_v28  ;;  %v1348_v51 = vsub.s32 32, %v1329_v27  ;;  %v115_v52 = vshrl.u32 %v1258_v29, %v114_v28  ;;  %vm133_vm5 = vcmp.lt.s32.totalorder %v1327_v26, 3 }
  0x14   :  { %v118_v48 = vor.u32 %v117_v41, %v116_v30  ;;  %v121_v49 = vor.u32 %v120_v42, %v119_v32  ;;  %v124_v50 = vor.u32 %v123_v43, %v122_v34  ;;  %v127_v53 = vor.u32 %v126_v45, %v125_v36 }
  0x15   :  { %v130_v54 = vor.u32 %v129_v47, %v128_v38  ;;  %vm132_vm6 = vcmp.lt.s32.totalorder %v1327_v26, 2  ;;  %v270_v60 = vshll.u32 %v1258_v29, %v1329_v27  ;;  %v273_v61 = vshll.u32 %v1259_v31, %v1329_v27 }
  0x16   :  { %v139_v55 = vsel %vm131_vm3, %v118_v48, %v121_v49  ;;  %v143_v56 = vsel %vm131_vm3, %v121_v49, %v124_v50  ;;  %v140_v58 = vsel %vm134_vm4, %v127_v53, 920167782  ;;  %v136_v62 = vsel %vm134_vm4, %v124_v50, 2102212464 }
  0x17   :  { %v144_v59 = vsel %vm134_vm4, %v130_v54, 1326507024  ;;  %v141_v63 = vsel %vm133_vm5, %v124_v50, %v140_v58  ;;  %v271_v4 = vshrl.u32 %v1259_v31, %v1348_v51  ;;  %v135_v8 = vsel %vm131_vm3, %v115_v52, %v118_v48 }
  0x18   :  { %v145_v0 = vsel %vm133_vm5, %v127_v53, %v144_v59  ;;  %v142_v9 = vsel %vm132_vm6, %v139_v55, %v141_v63  ;;  %v274_v12 = vshrl.u32 %v1260_v33, %v1348_v51  ;;  %v137_v17 = vsel %vm133_vm5, %v121_v49, %v136_v62 }
  0x19   :  { %v146_v11 = vsel %vm132_vm6, %v143_v56, %v145_v0  ;;  %v172_v15 = vand.u32 65535, %v142_v9  ;;  %v173_v16 = vshrl.u32 %v142_v9, 16  ;;  %v1385_v18 = vor.u32 %v271_v4, %v270_v60 }
  0x1a   :  { %v150_v13 = vand.u32 65535, %v146_v11  ;;  %v151_v14 = vshrl.u32 %v146_v11, 16  ;;  %v1387_v19 = vor.u32 %v274_v12, %v273_v61  ;;  %v276_v20 = vshll.u32 %v1260_v33, %v1329_v27 }
  0x1b   :  { %v277_v25 = vshrl.u32 %v1261_v35, %v1348_v51  ;;  %v174_v30 = vmul.u32 %v172_v15, %v148_v39  ;;  %v175_v32 = vmul.u32 %v173_v16, %v148_v39  ;;  %v176_v34 = vmul.u32 %v172_v15, %v149_v44 }
  0x1c   :  { %v152_v21 = vmul.u32 %v150_v13, %v148_v39  ;;  %v153_v23 = vmul.u32 %v151_v14, %v148_v39  ;;  %v154_v24 = vmul.u32 %v150_v13, %v149_v44  ;;  %v155_v28 = vmul.u32 %v151_v14, %v149_v44 }
  0x1d   :  { %v177_v42 = vmul.u32 %v173_v16, %v149_v44  ;;  %v178_v45 = vshll.u32 %v175_v32, 16  ;;  %v179_v47 = vshrl.u32 %v175_v32, 16  ;;  %v180_v48 = vshll.u32 %v176_v34, 16 }
  0x1e   :  { %v156_v36 = vshll.u32 %v153_v23, 16  ;;  %v157_v38 = vshrl.u32 %v153_v23, 16  ;;  %v158_v41 = vshll.u32 %v154_v24, 16  ;;  %v159_v43 = vshrl.u32 %v154_v24, 16 }
  0x1f   :  { %v181_v50 = vshrl.u32 %v176_v34, 16  ;;  %v279_v52 = vshll.u32 %v1261_v35, %v1329_v27  ;;  %vm182_vm8 = vc.u32 %v174_v30, %v178_v45  ;;  %v184_v54 = vadd.s32 %v178_v45, %v174_v30 }
  0x20   :  { %vm160_vm7 = vc.u32 %v152_v21, %v156_v36  ;;  %v162_v49 = vadd.s32 %v156_v36, %v152_v21  ;;  %v280_v39 = vshrl.u32 %v1262_v37, %v1348_v51  ;;  %v183_v44 = vsel %vm182_vm8, 1, %v1257_v1 }
  0x21   :  { %v161_v53 = vsel %vm160_vm7, 1, %v1257_v1  ;;  %v282_v56 = vshll.u32 %v1262_v37, %v1329_v27  ;;  %v185_v59 = vadd.s32 %v183_v44, %v177_v42  ;;  %vm186_vm10 = vc.u32 %v184_v54, %v180_v48 }
  0x22   :  { %v163_v55 = vadd.s32 %v161_v53, %v155_v28  ;;  %vm164_vm9 = vc.u32 %v162_v49, %v158_v41  ;;  %v278_v60 = vor.u32 %v277_v25, %v276_v20  ;;  %v187_v62 = vsel %vm186_vm10, 1, %v1257_v1 }
  0x23   :  { %v165_v58 = vsel %vm164_vm9, 1, %v1257_v1  ;;  %v281_v63 = vor.u32 %v280_v39, %v279_v52  ;;  %v283_v0 = vshrl.u32 %v1263_v46, %v1348_v51  ;;  %v1405_v4 = vadd.s32 %v184_v54, %v180_v48 }
  0x24   :  { %v167_v61 = vadd.s32 %v165_v58, %v163_v55  ;;  %v189_v9 = vadd.s32 %v187_v62, %v185_v59  ;;  %vm285_vm11 = vcmp.lt.s32.totalorder %v1357_v57, 1  ;;  %vm287_vm12 = vcmp.lt.s32.totalorder %v1357_v57, 3 }
  0x25   :  { %v284_v11 = vor.u32 %v283_v0, %v282_v56  ;;  %vm286_vm13 = vcmp.lt.s32.totalorder %v1357_v57, 2  ;;  %vm288_vm14 = vcmp.lt.s32.totalorder %v1357_v57, 4  ;;  %v138_v12 = vsel %vm132_vm6, %v135_v8, %v137_v17 }
  0x26   :  { %v168_v27 = vadd.s32 %v167_v61, %v157_v38  ;;  %v190_v13 = vadd.s32 %v189_v9, %v179_v47  ;;  %v293_v14 = vsel %vm285_vm11, %v1385_v18, %v1387_v19  ;;  %v294_v15 = vsel %vm288_vm14, %v281_v63, 920167782 }
  0x27   :  { %v295_v20 = vsel %vm287_vm12, %v278_v60, %v294_v15  ;;  %v297_v21 = vsel %vm285_vm11, %v1387_v19, %v278_v60  ;;  %v303_v26 = vshrl.u32 %v1337_v40, 16  ;;  %v298_v23 = vsel %vm288_vm14, %v284_v11, 1326507024 }
  0x28   :  { %v1419_v16 = vadd.s32 %v168_v27, %v159_v43  ;;  %v191_v8 = vadd.s32 %v190_v13, %v181_v50  ;;  %v296_v17 = vsel %vm286_vm13, %v293_v14, %v295_v20  ;;  %v302_v24 = vand.u32 65535, %v1337_v40 }
  0x29   :  { %v192_v25 = vmul.u32 %v1325_v22, %v138_v12  ;;  %v299_v28 = vsel %vm287_vm12, %v281_v63, %v298_v23  ;;  %v326_v30 = vand.u32 65535, %v296_v17  ;;  %v327_v36 = vshrl.u32 %v296_v17, 16 }
  0x2a   :  { %vm194_vm15 = vc.u32 %v1419_v16, %v1405_v4  ;;  %v195_v32 = vadd.s32 1, %v191_v8  ;;  %v300_v34 = vsel %vm286_vm13, %v297_v21, %v299_v28  ;;  %v269_v58 = vshrl.u32 %v1258_v29, %v1348_v51 }
  0x2b   :  { %v304_v38 = vand.u32 65535, %v300_v34  ;;  %v305_v41 = vshrl.u32 %v300_v34, 16  ;;  %v330_v42 = vmul.u32 %v326_v30, %v303_v26  ;;  %v328_v45 = vmul.u32 %v326_v30, %v302_v24 }
  0x2c   :  { %v196_v43 = vsel %vm194_vm15, %v195_v32, %v191_v8  ;;  %v329_v47 = vmul.u32 %v327_v36, %v302_v24  ;;  %v331_v52 = vmul.u32 %v327_v36, %v303_v26  ;;  %v290_v0 = vsel %vm288_vm14, %v278_v60, 2102212464 }
  0x2d   :  { %v197_v48 = vadd.s32 %v196_v43, %v192_v25  ;;  %v306_v22 = vmul.u32 %v304_v38, %v302_v24  ;;  %v307_v49 = vmul.u32 %v305_v41, %v302_v24  ;;  %v308_v50 = vmul.u32 %v304_v38, %v303_v26 }
  0x2e   :  { %v332_v53 = vshll.u32 %v329_v47, 16  ;;  %v334_v54 = vshll.u32 %v330_v42, 16  ;;  %v309_v55 = vmul.u32 %v305_v41, %v303_v26  ;;  %v289_v51 = vsel %vm285_vm11, %v269_v58, %v1385_v18 }
  0x2f   :  { %v198_v39 = vadd.s32 536870912, %v197_v48  ;;  %v310_v44 = vshll.u32 %v307_v49, 16  ;;  %v312_v56 = vshll.u32 %v308_v50, 16  ;;  %v311_v12 = vshrl.u32 %v307_v49, 16 }
  0x30   :  { %vm336_vm0 = vc.u32 %v328_v45, %v332_v53  ;;  %v338_v59 = vadd.s32 %v332_v53, %v328_v45  ;;  %v333_v15 = vshrl.u32 %v329_v47, 16  ;;  %v291_v60 = vsel %vm287_vm12, %v1387_v19, %v290_v0 }
  0x31   :  { %v1441_v61 = vshrl.u32 %v198_v39, 30  ;;  %vm314_vm1 = vc.u32 %v306_v22, %v310_v44  ;;  %v316_v62 = vadd.s32 %v310_v44, %v306_v22  ;;  %v337_v63 = vsel %vm336_vm0, 1, %v1257_v1 }
  0x32   :  { %v315_v9 = vsel %vm314_vm1, 1, %v1257_v1  ;;  %v339_v27 = vadd.s32 %v337_v63, %v331_v52  ;;  %vm340_vm2 = vc.u32 %v338_v59, %v334_v54  ;;  %v313_v26 = vshrl.u32 %v308_v50, 16 }
  0x33   :  { %v200_v11 = vshll.u32 %v1441_v61, 30  ;;  %v317_v13 = vadd.s32 %v315_v9, %v309_v55  ;;  %vm318_vm3 = vc.u32 %v316_v62, %v312_v56  ;;  %v341_v20 = vsel %vm340_vm2, 1, %v1257_v1 }
  0x34   :  { %v319_v14 = vsel %vm318_vm3, 1, %v1257_v1  ;;  %v335_v17 = vshrl.u32 %v330_v42, 16  ;;  %v343_v23 = vadd.s32 %v341_v20, %v339_v27  ;;  %v342_v28 = vadd.s32 %v338_v59, %v334_v54 }
  0x35   :  { %v201_v21 = vsub.s32 %v197_v48, %v200_v11  ;;  %v321_v8 = vadd.s32 %v319_v14, %v317_v13  ;;  %v292_v18 = vsel %vm286_vm13, %v289_v51, %v291_v60  ;;  %v193_v42 = vadd.s32 %v1405_v4, %v1419_v16 }
  0x36   :  { %v344_v30 = vadd.s32 %v343_v23, %v333_v15  ;;  %v346_v41 = vmul.u32 %v1337_v40, %v292_v18  ;;  %v223_v59 = vsub.s32 4, %v1441_v61  ;;  %vm101_vm7 = vcmp.lt.s32.totalorder %v1309_v5, 0 }
  0x37   :  { %vm202_vm4 = vcmp.lt.s32.totalorder %v201_v21, 0  ;;  %v203_v24 = vsub.s32 0, %v201_v21  ;;  %v322_v25 = vadd.s32 %v321_v8, %v311_v12  ;;  %vm100_vm9 = vcmp.le.f32.partialorder %v99_v7, 0.7853982 }
  0x38   :  { %v345_v38 = vadd.s32 %v344_v30, %v335_v17  ;;  %v224_v27 = vsel %vm101_vm7, %v223_v59, %v1441_v61  ;;  %vm255_vm13 = vcmp.lt.s32.totalorder %v1312_v6, 0  ;;  %vm242_vm2 = vweird.f32 %v1309_v5 }
  0x39   :  { %v204_v32 = vsel %vm202_vm4, %v203_v24, %v201_v21  ;;  %v323_v34 = vadd.s32 %v322_v25, %v313_v26  ;;  %v226_v14 = vsel %vm100_vm9, 0, %v224_v27  ;;  %vm254_vm3 = vcmp.le.f32.partialorder %v253_v10, 0.7853982 }
  0x3a   :  { %v205_v36 = vclz %v204_v32  ;;  %v349_v43 = vadd.s32 1, %v345_v38  ;;  %v551_v23 = vadd.s32 3, %v226_v14 }
  0x3b   :  { %vm348_vm5 = vc.u32 %v323_v34, %v342_v28 }
  0x3c   :  { %v1208_v19 = vadd.s32 4294967294, %v205_v36  ;;  %v350_v45 = vsel %vm348_vm5, %v349_v43, %v345_v38  ;;  %vm396_vm5 = vweird.f32 %v1312_v6 }
  0x3d   :  { %v351_v48 = vadd.s32 %v350_v45, %v346_v41  ;;  %v552_v41 = vand.u32 3, %v551_v23 }
  0x3e   :  { %vm1209_vm6 = vcmp.lt.s32.totalorder %v1208_v19, 0 }
  0x3f   :  { %v208_v47 = vsel %vm1209_vm6, 0, %v1208_v19  ;;  %v352_v53 = vadd.s32 536870912, %v351_v48  ;;  %v243_v19 = vand.u32 3, %v226_v14  ;;  %vm557_vm11 = vcmp.eq.s32.totalorder %v552_v41, 2 }
  0x40   :  { %v209_v22 = vsub.s32 32, %v208_v47  ;;  %v210_v57 = vshll.u32 %v201_v21, %v208_v47  ;;  %v213_v49 = vsub.s32 4294967266, %v208_v47  ;;  %v347_v21 = vadd.s32 %v342_v28, %v323_v34 }
  0x41   :  { %v1461_v55 = vshrl.u32 %v352_v53, 30  ;;  %vm248_vm12 = vcmp.eq.s32.totalorder %v243_v19, 2  ;;  %vm553_vm14 = vcmp.lt.s32.totalorder %v552_v41, 2  ;;  %vm554_vm15 = vcmp.eq.s32.totalorder %v552_v41, 0 }
  0x42   :  { %v211_v50 = vshrl.u32 %v193_v42, %v209_v22  ;;  %v214_v52 = vadd.s32 127, %v213_v49  ;;  %vm245_vm0 = vcmp.eq.s32.totalorder %v243_v19, 0  ;;  %vm244_vm1 = vcmp.lt.s32.totalorder %v243_v19, 2 }
  0x43   :  { %v354_v56 = vshll.u32 %v1461_v55, 30 }
  0x44   :  { %v212_v54 = vor.u32 %v211_v50, %v210_v57  ;;  %v215_v39 = vshll.u32 %v214_v52, 23  ;;  %v377_v50 = vsub.s32 4, %v1461_v55 }
  0x45   :  { %v355_v4 = vsub.s32 %v351_v48, %v354_v56 }
  0x46   :  { %v216_v40 = vor.u32 4788187, %v215_v39  ;;  %v219_v44 = vcvt.s32.f32 %v212_v54 }
  0x47   :  { %vm356_vm8 = vcmp.lt.s32.totalorder %v355_v4, 0  ;;  %v357_v62 = vsub.s32 0, %v355_v4 }
  0x48   :  { %v217_v58 = vand.u32 2147483647, %v216_v40  ;;  %v26_v40 = vld [vmem:[%s1650_s3] sm:$0x1] }
  0x49   :  { %v358_v0 = vsel %vm356_vm8, %v357_v62, %v355_v4  ;;  %v1478_v56 = vmul.f32 0.03141593, %v26_v40 }
  0x4a   :  { %v220_v16 = vmul.f32 %v219_v44, %v217_v58  ;;  %v359_v11 = vclz %v358_v0 }
  0x4c   :  { %v221_v63 = vxor.u32 2147483648, %v220_v16  ;;  %v1211_v51 = vadd.s32 4294967294, %v359_v11 }
  0x4e   :  { %v222_v9 = vsel %vm101_vm7, %v221_v63, %v220_v16  ;;  %vm1212_vm10 = vcmp.lt.s32.totalorder %v1211_v51, 0  ;;  %v378_v16 = vsel %vm255_vm13, %v377_v50, %v1461_v55 }
  0x4f   :  { %v225_v12 = vsel %vm100_vm9, %v1309_v5, %v222_v9  ;;  %v362_v60 = vsel %vm1212_vm10, 0, %v1211_v51  ;;  %v720_v5 = vand.u32 2139095040, %v1478_v56  ;;  %v380_v27 = vsel %vm254_vm3, 0, %v378_v16 }
  0x50   :  { %v227_v13 = vmul.f32 %v225_v12, %v225_v12  ;;  %v363_v17 = vsub.s32 32, %v362_v60  ;;  %v364_v7 = vshll.u32 %v355_v4, %v362_v60  ;;  %v367_v24 = vsub.s32 4294967266, %v362_v60 }
  0x51   :  { %v706_v14 = vadd.s32 3, %v380_v27 }
  0x52   :  { %v228_v15 = vmul.f32 -0.001358992, %v227_v13  ;;  %v235_v20 = vmul.f32 -0.00019511016, %v227_v13  ;;  %v365_v61 = vshrl.u32 %v347_v21, %v363_v17  ;;  %v368_v30 = vadd.s32 127, %v367_v24 }
  0x53   :  { %v397_v24 = vand.u32 3, %v380_v27 }
  0x54   :  { %v229_v26 = vadd.f32 0.041655596, %v228_v15  ;;  %v236_v8 = vadd.f32 0.008332121, %v235_v20  ;;  %v366_v38 = vor.u32 %v365_v61, %v364_v7  ;;  %v369_v43 = vshll.u32 %v368_v30, 23 }
  0x55   :  { %vm402_vm9 = vcmp.eq.s32.totalorder %v397_v24, 2  ;;  %vm398_vm10 = vcmp.lt.s32.totalorder %v397_v24, 2 }
  0x56   :  { %v230_v25 = vmul.f32 %v229_v26, %v227_v13  ;;  %v237_v18 = vmul.f32 %v236_v8, %v227_v13  ;;  %v370_v34 = vor.u32 4788187, %v369_v43  ;;  %v373_v45 = vcvt.s32.f32 %v366_v38 }
  0x57   :  { %v707_v8 = vand.u32 3, %v706_v14 }
  0x58   :  { %v231_v32 = vadd.f32 -0.4999988, %v230_v25  ;;  %v238_v36 = vadd.f32 -0.16666654, %v237_v18  ;;  %v371_v22 = vand.u32 2147483647, %v370_v34 }
  0x59   :  { %vm708_vm6 = vcmp.lt.s32.totalorder %v707_v8, 2  ;;  %vm709_vm7 = vcmp.eq.s32.totalorder %v707_v8, 0  ;;  %vm712_vm8 = vcmp.eq.s32.totalorder %v707_v8, 2 }
  0x5a   :  { %v232_v42 = vmul.f32 %v231_v32, %v227_v13  ;;  %v239_v28 = vmul.f32 %v238_v36, %v227_v13  ;;  %v374_v52 = vmul.f32 %v373_v45, %v371_v22  ;;  %v717_v32 = vand.u32 2147483647, %v1478_v56 }
  0x5c   :  { %v233_v47 = vadd.f32 1.0, %v232_v42  ;;  %v240_v48 = vadd.f32 1.0, %v239_v28  ;;  %v375_v44 = vxor.u32 2147483648, %v374_v52  ;;  %v724_v19 = vand.u32 8388607, %v717_v32 }
  0x5e   :  { %v241_v57 = vmul.f32 %v240_v48, %v225_v12  ;;  %v249_v49 = vxor.u32 2147483648, %v233_v47  ;;  %v376_v63 = vsel %vm255_vm13, %v375_v44, %v374_v52  ;;  %v721_v12 = vshrl.u32 %v720_v5, 23 }
  0x5f   :  { %v379_v10 = vsel %vm254_vm3, %v1312_v6, %v376_v63  ;;  %v725_v22 = vor.u32 8388608, %v724_v19 }
  0x60   :  { %v246_v53 = vxor.u32 2147483648, %v241_v57  ;;  %v559_v54 = vsel %vm557_vm11, %v249_v49, %v241_v57  ;;  %v250_v39 = vsel %vm248_vm12, %v249_v49, %v241_v57  ;;  %v381_v11 = vmul.f32 %v379_v10, %v379_v10 }
  0x61   :  { %v1219_v55 = vadd.s32 4294967169, %v721_v12  ;;  %vm399_vm11 = vcmp.eq.s32.totalorder %v397_v24, 0  ;;  %v1529_v27 = vshll.u32 %v725_v22, 8 }
  0x62   :  { %v556_v58 = vsel %vm554_vm15, %v233_v47, %v246_v53  ;;  %v247_v4 = vsel %vm245_vm0, %v233_v47, %v246_v53  ;;  %v382_v13 = vmul.f32 -0.001358992, %v381_v11  ;;  %v389_v51 = vmul.f32 -0.00019511016, %v381_v11 }
  0x63   :  { %v560_v59 = vsel %vm553_vm14, %v556_v58, %v559_v54  ;;  %v251_v62 = vsel %vm244_vm1, %v247_v4, %v250_v39  ;;  %v727_v21 = vadd.s32 1, %v1219_v55  ;;  %vm1068_vm0 = vcmask 130048  }
  0x64   :  { %v561_v0 = vsel %vm242_vm2, nan, %v560_v59  ;;  %v252_v9 = vsel %vm242_vm2, nan, %v251_v62  ;;  %v383_v15 = vadd.f32 0.041655596, %v382_v13  ;;  %v390_v20 = vadd.f32 0.008332121, %v389_v51 }
  0x65   :  { %1043 = vperm.xlu1 %1239, %v561_v0   ;;  %1028 = vperm.xlu0 %1238, %v252_v9   ;;  %vm728_vm4 = vcmp.gt.s32.totalorder %v727_v21, 0  ;;  %v766_v13 = vand.u32 65535, %v1529_v27  ;;  %v767_v51 = vshrl.u32 %v1529_v27, 16 }
  0x66   :  { %v384_v60 = vmul.f32 %v383_v15, %v381_v11  ;;  %v391_v26 = vmul.f32 %v390_v20, %v381_v11  ;;  %v729_v17 = vsel %vm728_vm4, %v727_v21, 0 }
  0x67   :  { %v731_v25 = vand.u32 31, %v729_v17  ;;  %v1498_v57 = vshrl.u32 %v729_v17, 5 }
  0x68   :  { %v385_v7 = vadd.f32 -0.4999988, %v384_v60  ;;  %v392_v23 = vadd.f32 -0.16666654, %v391_v26 }
  0x69   :  { %v732_v30 = vsub.s32 32, %v731_v25  ;;  %v743_v41 = vshll.u32 %v1261_v35, %v731_v25  ;;  %v734_v43 = vshll.u32 %v1258_v29, %v731_v25  ;;  %v737_v47 = vshll.u32 %v1259_v31, %v731_v25 }
  0x6a   :  { %v386_v18 = vmul.f32 %v385_v7, %v381_v11  ;;  %v393_v61 = vmul.f32 %v392_v23, %v381_v11  ;;  %v740_v39 = vshll.u32 %v1260_v33, %v731_v25  ;;  %v746_v4 = vshll.u32 %v1262_v37, %v731_v25 }
  0x6b   :  { %v735_v42 = vshrl.u32 %v1259_v31, %v732_v30  ;;  %v744_v28 = vshrl.u32 %v1262_v37, %v732_v30  ;;  %v738_v48 = vshrl.u32 %v1260_v33, %v732_v30  ;;  %v741_v40 = vshrl.u32 %v1261_v35, %v732_v30 }
  0x6c   :  { %v387_v36 = vadd.f32 1.0, %v386_v18  ;;  %v394_v38 = vadd.f32 1.0, %v393_v61  ;;  %v747_v16 = vshrl.u32 %v1263_v46, %v732_v30  ;;  %vm749_vm12 = vcmp.lt.s32.totalorder %v1498_v57, 1 }
  0x6d   :  { %v736_v53 = vor.u32 %v735_v42, %v734_v43  ;;  %v739_v54 = vor.u32 %v738_v48, %v737_v47  ;;  %v745_v44 = vor.u32 %v744_v28, %v743_v41  ;;  %v742_v63 = vor.u32 %v741_v40, %v740_v39 }
  0x6e   :  { %v395_v34 = vmul.f32 %v394_v38, %v379_v10  ;;  %v403_v45 = vxor.u32 2147483648, %v387_v36  ;;  %v748_v5 = vor.u32 %v747_v16, %v746_v4  ;;  %vm750_vm13 = vcmp.lt.s32.totalorder %v1498_v57, 2 }
  0x6f   :  { %vm751_vm14 = vcmp.lt.s32.totalorder %v1498_v57, 3  ;;  %vm752_vm15 = vcmp.lt.s32.totalorder %v1498_v57, 4  ;;  %v757_v37 = vsel %vm749_vm12, %v736_v53, %v739_v54  ;;  %v761_v0 = vsel %vm749_vm12, %v739_v54, %v742_v63 }
  0x70   :  { %v400_v49 = vxor.u32 2147483648, %v395_v34  ;;  %v714_v50 = vsel %vm712_vm8, %v403_v45, %v395_v34  ;;  %v404_v52 = vsel %vm402_vm9, %v403_v45, %v395_v34  ;;  %v758_v46 = vsel %vm752_vm15, %v745_v44, 920167782 }
  0x71   :  { %v762_v6 = vsel %vm752_vm15, %v748_v5, 1326507024  ;;  %v759_v9 = vsel %vm751_vm14, %v742_v63, %v758_v46  ;;  %v733_v21 = vshrl.u32 %v1258_v29, %v732_v30  ;;  %v754_v17 = vsel %vm752_vm15, %v742_v63, 2102212464 }
  0x72   :  { %v711_v31 = vsel %vm709_vm7, %v387_v36, %v400_v49  ;;  %v401_v58 = vsel %vm399_vm11, %v387_v36, %v400_v49  ;;  %v763_v10 = vsel %vm751_vm14, %v745_v44, %v762_v6  ;;  %v760_v11 = vsel %vm750_vm13, %v757_v37, %v759_v9 }
  0x73   :  { %v715_v59 = vsel %vm708_vm6, %v711_v31, %v714_v50  ;;  %v405_v62 = vsel %vm398_vm10, %v401_v58, %v404_v52  ;;  %v764_v12 = vsel %vm750_vm13, %v761_v0, %v763_v10  ;;  %v790_v15 = vand.u32 65535, %v760_v11 }
  0x74   :  { %v716_v33 = vsel %vm396_vm5, nan, %v715_v59  ;;  %v406_v35 = vsel %vm396_vm5, nan, %v405_v62  ;;  %v768_v55 = vand.u32 65535, %v764_v12  ;;  %v769_v14 = vshrl.u32 %v764_v12, 16 }
  0x75   :  { %1048 = vperm.xlu1 %1239, %v716_v33   ;;  %1033 = vperm.xlu0 %1238, %v406_v35   ;;  %v791_v20 = vshrl.u32 %v760_v11, 16  ;;  %v792_v7 = vmul.u32 %v790_v15, %v766_v13  ;;  %v794_v24 = vmul.u32 %v790_v15, %v767_v51  ;;  %v753_v30 = vsel %vm749_vm12, %v733_v21, %v736_v53 }
  0x76   :  { %v770_v60 = vmul.u32 %v768_v55, %v766_v13  ;;  %v771_v26 = vmul.u32 %v769_v14, %v766_v13  ;;  %v772_v8 = vmul.u32 %v768_v55, %v767_v51  ;;  %v773_v25 = vmul.u32 %v769_v14, %v767_v51 }
  0x77   :  { %v793_v23 = vmul.u32 %v791_v20, %v766_v13  ;;  %v795_v36 = vmul.u32 %v791_v20, %v767_v51  ;;  %v798_v29 = vshll.u32 %v794_v24, 16  ;;  %v755_v41 = vsel %vm751_vm14, %v739_v54, %v754_v17 }
  0x78   :  { %v774_v18 = vshll.u32 %v771_v26, 16  ;;  %v776_v61 = vshll.u32 %v772_v8, 16  ;;  %v775_v42 = vshrl.u32 %v771_v26, 16  ;;  %v777_v50 = vshrl.u32 %v772_v8, 16 }
  0x79   :  { %v796_v38 = vshll.u32 %v793_v23, 16  ;;  %v797_v48 = vshrl.u32 %v793_v23, 16  ;;  %v799_v54 = vshrl.u32 %v794_v24, 16  ;;  %v756_v31 = vsel %vm750_vm13, %v753_v30, %v755_v41 }
  0x7a   :  { %vm778_vm1 = vc.u32 %v770_v60, %v774_v18  ;;  %v780_v19 = vadd.s32 %v774_v18, %v770_v60  ;;  %v810_v63 = vmul.u32 %v1529_v27, %v756_v31  ;;  %vm719_vm8 = vcmp.lt.s32.totalorder %v1478_v56, 0 }
  0x7b   :  { %vm800_vm2 = vc.u32 %v792_v7, %v796_v38  ;;  %vm1564_vm9 = vcmp.le.f32.partialorder %v717_v32, 0.7853982 }
  0x7c   :  { %vm782_vm3 = vc.u32 %v780_v19, %v776_v61  ;;  %v801_v45 = vsel %vm800_vm2, 1, %v1257_v1 }
  0x7d   :  { %1090 = vperm.xlu0 %1238, %v1298_v2   ;;  %1095 = vperm.xlu1 %1239, %v1303_v3   ;;  %v779_v2 = vsel %vm778_vm1, 1, %v1257_v1  ;;  %v802_v3 = vadd.s32 %v796_v38, %v792_v7  ;;  %v783_v47 = vsel %vm782_vm3, 1, %v1257_v1  ;;  %v803_v22 = vadd.s32 %v801_v45, %v795_v36 }
  0x7e   :  { %v781_v34 = vadd.s32 %v779_v2, %v773_v25  ;;  %vm860_vm1 = vweird.f32 %v1478_v56 }
  0x7f   :  { %vm804_vm4 = vc.u32 %v802_v3, %v798_v29  ;;  %v806_v44 = vadd.s32 %v802_v3, %v798_v29 }
  0x80   :  { %v785_v52 = vadd.s32 %v783_v47, %v781_v34  ;;  %v805_v53 = vsel %vm804_vm4, 1, %v1257_v1 }
  0x81   :  { %v807_v39 = vadd.s32 %v805_v53, %v803_v22 }
  0x82   :  { %v786_v40 = vadd.s32 %v785_v52, %v775_v42 }
  0x83   :  { %v808_v58 = vadd.s32 %v807_v39, %v797_v48 }
  0x84   :  { %v787_v4 = vadd.s32 %v786_v40, %v777_v50 }
  0x85   :  { %v809_v59 = vadd.s32 %v808_v58, %v799_v54 }
  0x86   :  { %v57_v43 = vpop.f32.mrf.mxu0  ;;  %vm812_vm5 = vc.u32 %v787_v4, %v806_v44  ;;  %v811_v12 = vadd.s32 %v806_v44, %v787_v4 }
  0x87   :  { %v1547_v28 = vclamps-f32 %v57_v43, 1.0  ;;  %v813_v33 = vadd.s32 1, %v809_v59 }
  0x89   :  { %v1069_v49 = vsel %vm1068_vm0, %v1547_v28, -inf  ;;  %v814_v35 = vsel %vm812_vm5, %v813_v33, %v809_v59  ;;  %v66_v29 = vmul.f32 %v1547_v28, %v1547_v28 }
  0x8a   :  { %1070 = vmax.xlane.f32.xlu2 %v1069_v49  ;;  %v815_v5 = vadd.s32 %v814_v35, %v810_v63 }
  0x8b   :  { %v68_v32 = vsub.f32 1.0, %v66_v29 }
  0x8c   :  { %v816_v37 = vadd.s32 536870912, %v815_v5 }
  0x8d   :  { %v1575_v2 = vadd.f32 1e-06, %v68_v32 }
  0x8e   :  { %v59_v16 = vpop.f32.mrf.mxu0  ;;  %v817_v46 = vshrl.u32 %v816_v37, 30 }
  0x8f   :  { %v1556_v62 = vclamps-f32 %v59_v16, 1.0  ;;  %1241 = vrsqrt.f32 %v1575_v2  ;;  %vm79_vm2 = vcmp.eq.f32.partialorder %v1575_v2, inf }
  0x90   :  { %v818_v57 = vshll.u32 %v817_v46, 30  ;;  %v841_v19 = vsub.s32 4, %v817_v46 }
  0x91   :  { %v1072_v1 = vsel %vm1068_vm0, %v1556_v62, -inf  ;;  %v67_v3 = vmul.f32 %v1556_v62, %v1556_v62 }
  0x92   :  { %1073 = vmax.xlane.f32.xlu2 %v1072_v1  ;;  %v819_v0 = vsub.s32 %v815_v5, %v818_v57  ;;  %v842_v34 = vsel %vm719_vm8, %v841_v19, %v817_v46 }
  0x93   :  { %v844_v48 = vsel %vm1564_vm9, 0, %v842_v34  ;;  %v69_v22 = vsub.f32 1.0, %v67_v3  ;;  %v82_v3 = vand.u32 2147483648, %v1575_v2 }
  0x94   :  { %vm820_vm6 = vcmp.lt.s32.totalorder %v819_v0, 0  ;;  %v821_v6 = vsub.s32 0, %v819_v0  ;;  %v1015_v52 = vadd.s32 3, %v844_v48  ;;  %v861_v44 = vand.u32 3, %v844_v48 }
  0x95   :  { %v1584_v53 = vadd.f32 1e-06, %v69_v22  ;;  %v1242_v54 = vpop.eup %1241 }
  0x96   :  { %v822_v9 = vsel %vm820_vm6, %v821_v6, %v819_v0  ;;  %v1016_v31 = vand.u32 3, %v1015_v52  ;;  %v73_v58 = vmul.f32 %v1242_v54, %v1575_v2  ;;  %vm863_vm10 = vcmp.eq.s32.totalorder %v861_v44, 0 }
  0x97   :  { %v823_v10 = vclz %v822_v9  ;;  %1243 = vrsqrt.f32 %v1584_v53  ;;  %vm866_vm11 = vcmp.eq.s32.totalorder %v861_v44, 2  ;;  %vm862_vm14 = vcmp.lt.s32.totalorder %v861_v44, 2 }
  0x98   :  { %vm1018_vm12 = vcmp.eq.s32.totalorder %v1016_v31, 0  ;;  %vm1021_vm13 = vcmp.eq.s32.totalorder %v1016_v31, 2  ;;  %vm1017_vm15 = vcmp.lt.s32.totalorder %v1016_v31, 2  ;;  %v74_v59 = vmul.f32 %v1242_v54, %v73_v58 }
  0x99   :  { %v1220_v11 = vadd.s32 4294967294, %v823_v10  ;;  %vm81_vm6 = vcmp.eq.f32.partialorder %v1575_v2, 0.0 }
  0x9b   :  { %vm1221_vm7 = vcmp.lt.s32.totalorder %v1220_v11, 0 }
  0x9c   :  { %v826_v27 = vsel %vm1221_vm7, 0, %v1220_v11  ;;  %vm91_vm7 = vcmp.eq.f32.partialorder %v1584_v53, inf }
  0x9d   :  { %v827_v13 = vsub.s32 32, %v826_v27  ;;  %v828_v51 = vshll.u32 %v819_v0, %v826_v27  ;;  %v831_v55 = vsub.s32 4294967266, %v826_v27  ;;  %v1244_v5 = vpop.eup %1243  ;;  %v75_v0 = vmul.f32 0.5, %v74_v59 }
  0x9e   :  { %v85_v6 = vmul.f32 %v1244_v5, %v1584_v53 }
  0x9f   :  { %v829_v14 = vshrl.u32 %v811_v12, %v827_v13  ;;  %v832_v15 = vadd.s32 127, %v831_v55  ;;  %v76_v12 = vsub.f32 1.5, %v75_v0 }
  0xa0   :  { %v86_v27 = vmul.f32 %v1244_v5, %v85_v6 }
  0xa1   :  { %v830_v20 = vor.u32 %v829_v14, %v828_v51  ;;  %v833_v21 = vshll.u32 %v832_v15, 23  ;;  %v77_v55 = vmul.f32 %v1242_v54, %v76_v12  ;;  %v1078_v15 = vlaneseq }
  0xa2   :  { %v87_v14 = vmul.f32 0.5, %v86_v27 }
  0xa3   :  { %v834_v60 = vor.u32 4788187, %v833_v21  ;;  %v837_v26 = vcvt.s32.f32 %v830_v20  ;;  %v1591_v23 = vand.u32 127, %v1078_v15 }
  0xa5   :  { %v835_v8 = vand.u32 2147483647, %v834_v60 }
  0xa7   :  { %v838_v17 = vmul.f32 %v837_v26, %v835_v8  ;;  %v78_v8 = vmul.f32 %v77_v55, %v1575_v2 }
  0xa9   :  { %v839_v7 = vxor.u32 2147483648, %v838_v17 }
  0xab   :  { %v840_v24 = vsel %vm719_vm8, %v839_v7, %v838_v17  ;;  %v88_v17 = vsub.f32 1.5, %v87_v14  ;;  %v1079_v7 = vshrl.u32 %v1078_v15, 7  ;;  %vm93_vm8 = vcmp.eq.f32.partialorder %v1584_v53, 0.0 }
  0xac   :  { %v843_v25 = vsel %vm1564_vm9, %v1478_v56, %v840_v24 }
  0xad   :  { %v845_v18 = vmul.f32 %v843_v25, %v843_v25  ;;  %vm1086_vm3 = vcmp.ne.s32.totalorder %v1079_v7, %v1591_v23  ;;  %v1080_v59 = vadd.s32 8, %v1079_v7 }
  0xaf   :  { %v853_v61 = vmul.f32 -0.00019511016, %v845_v18  ;;  %v846_v36 = vmul.f32 -0.001358992, %v845_v18  ;;  %vm1087_vm9 = vcmp.ne.s32.totalorder %v1080_v59, %v1591_v23 }
  0xb1   :  { %v854_v38 = vadd.f32 0.008332121, %v853_v61  ;;  %v847_v30 = vadd.f32 0.041655596, %v846_v36  ;;  %v1240_v61 = vld [vmem:[%s1650_s3] ss:$0 sm:$0xff]  ;;  %v80_v36 = vsel %vm79_vm2, %v1575_v2, %v78_v8 }
  0xb2   :  { %v83_v48 = vsel %vm81_vm6, %v82_v3, %v80_v36 }
  0xb3   :  { %v855_v41 = vmul.f32 %v854_v38, %v845_v18  ;;  %v848_v43 = vmul.f32 %v847_v30, %v845_v18  ;;  %v89_v38 = vmul.f32 %v1244_v5, %v88_v17 }
  0xb5   :  { %v856_v42 = vadd.f32 -0.16666654, %v855_v41  ;;  %v849_v45 = vadd.f32 -0.4999988, %v848_v43  ;;  %v90_v22 = vmul.f32 %v89_v38, %v1584_v53 }
  0xb7   :  { %v857_v47 = vmul.f32 %v856_v42, %v845_v18  ;;  %v850_v49 = vmul.f32 %v849_v45, %v845_v18  ;;  %v1264_v45 = vmov 0.0  }
  0xb9   :  { %v858_v50 = vadd.f32 1.0, %v857_v47  ;;  %v851_v39 = vadd.f32 1.0, %v850_v49 }
  0xbb   :  { %v859_v40 = vmul.f32 %v858_v50, %v843_v25  ;;  %v867_v16 = vxor.u32 2147483648, %v851_v39 }
  0xbd   :  { %v864_v4 = vxor.u32 2147483648, %v859_v40  ;;  %v868_v33 = vsel %vm866_vm11, %v867_v16, %v859_v40  ;;  %v1023_v35 = vsel %vm1021_vm13, %v867_v16, %v859_v40  ;;  %v92_v40 = vsel %vm91_vm7, %v1584_v53, %v90_v22 }
  0xbe   :  { %v94_v16 = vand.u32 2147483648, %v1584_v53 }
  0xbf   :  { %v865_v63 = vsel %vm863_vm10, %v851_v39, %v864_v4  ;;  %v1020_v1 = vsel %vm1018_vm12, %v851_v39, %v864_v4 }
  0xc0   :  { %v869_v37 = vsel %vm862_vm14, %v865_v63, %v868_v33  ;;  %v1024_v46 = vsel %vm1017_vm15, %v1020_v1, %v1023_v35  ;;  %v95_v33 = vsel %vm93_vm8, %v94_v16, %v92_v40 }
  0xc1   :  { %v870_v9 = vsel %vm860_vm1, nan, %v869_v37  ;;  %v1025_v10 = vsel %vm860_vm1, nan, %v1024_v46  ;;  %vm1185_vm1 = vcmask 7168  }
  0xc2   :  { %v1037_v13 = vperm.slane %v870_v9, 0  ;;  %v1052_v51 = vperm.slane %v1025_v10, 0 }
  0xd7   :  { %v1029_v57 = vpop.permute.xlu0 %1028  ;;  %v1044_v11 = vpop.permute.xlu1 %1043 }
  0xd8   :  { %v1054_v20 = vmul.f32 %v1052_v51, %v1044_v11  ;;  %v1060_v21 = vmul.f32 %v1044_v11, %v1037_v13  ;;  %v1039_v60 = vmul.f32 %v1037_v13, %v1029_v57  ;;  %v1062_v56 = vmul.f32 %v1052_v51, %v1029_v57 }
  0xda   :  { %v1056_v24 = vadd.f32 %v1054_v20, %v1039_v60  ;;  %v1064_v25 = vsub.f32 %v1060_v21, %v1062_v56 }
  0xdc   :  { %v1058_v29 = vsub.f32 0.0, %v1056_v24  ;;  %v1066_v30 = vand.u32 2147483647, %v1064_v25 }
  0xde   :  { %v1105_v50 = vmul.f32 %v1547_v28, %v1058_v29  ;;  %v1107_v52 = vmul.f32 %v1066_v30, %v83_v48 }
  0xe0   :  { %v1109_v44 = vsub.f32 %v1105_v50, %v1107_v52 }
  0xe7   :  { %v1034_v26 = vpop.permute.xlu0 %1033  ;;  %v1049_v18 = vpop.permute.xlu1 %1048 }
  0xe8   :  { %v1055_v41 = vmul.f32 %v1052_v51, %v1049_v18  ;;  %v1061_v19 = vmul.f32 %v1049_v18, %v1037_v13  ;;  %v1040_v43 = vmul.f32 %v1037_v13, %v1034_v26  ;;  %v1063_v42 = vmul.f32 %v1052_v51, %v1034_v26 }
  0xea   :  { %v1057_v54 = vadd.f32 %v1055_v41, %v1040_v43  ;;  %v1065_v39 = vsub.f32 %v1061_v19, %v1063_v42 }
  0xec   :  { %v1059_v31 = vsub.f32 0.0, %v1057_v54  ;;  %v1067_v58 = vand.u32 2147483647, %v1065_v39 }
  0xee   :  { %v1106_v5 = vmul.f32 %v1556_v62, %v1059_v31  ;;  %v1108_v37 = vmul.f32 %v1067_v58, %v95_v33 }
  0xef   :  { %v1091_v32 = vpop.permute.xlu0 %1090  ;;  %v1096_v1 = vpop.permute.xlu1 %1095 }
  0xf0   :  { %vm1101_vm4 = vcmp.eq.f32.partialorder %v1091_v32, %v1240_v61  ;;  %vm1102_vm10 = vcmp.eq.f32.partialorder %v1096_v1, %v1240_v61 }
  0xf1   :  { %vm1602_vm5 = vmand %vm1101_vm4, %vm1086_vm3 }
  0xf2   :  { %v1225_v47 = vsel %vm1602_vm5, 1.0, %v1264_v45  ;;  %vm1622_vm11 = vmand %vm1102_vm10, %vm1087_vm9 }
  0xf3   :  { %v1143_v49 = vsel %vm1068_vm0, %v1225_v47, 0.0  ;;  %v1226_v12 = vsel %vm1622_vm11, 1.0, %v1264_v45 }
  0xf4   :  { %1144 = vadd.xlane.f32.xlu1 %v1143_v49  ;;  %v1146_v13 = vsel %vm1068_vm0, %v1226_v12, 0.0 }
  0xfd   :  { %v1071_v2 = vpop.xlane.xlu2 %1070 }
  0xfe   :  { %v1075_v4 = vsub.f32 %v1547_v28, %v1071_v2  ;;  %v1110_v28 = vsub.f32 %v1106_v5, %v1108_v37 }
 0x100   :  { %v1111_v63 = vsel %vm1602_vm5, %v1075_v4, %v1109_v44 }
 0x101   :  { %v1113_v35 = vmul.f32 1.442695, %v1111_v63 }
 0x103   :  { %1245 = vpow2.f32 %v1113_v35 }
 0x105   :  { %v1074_v46 = vpop.xlane.xlu2 %1073 }
 0x106   :  { %v1076_v57 = vsub.f32 %v1556_v62, %v1074_v46 }
 0x108   :  { %v1112_v0 = vsel %vm1622_vm11, %v1076_v57, %v1110_v28 }
 0x109   :  { %v1246_v6 = vpop.eup %1245  ;;  %v1115_v9 = vmul.f32 1.442695, %v1112_v0 }
 0x10a   :  { %v1117_v10 = vsel %vm1086_vm3, %v1246_v6, 0.0 }
 0x10b   :  { %1247 = vpow2.f32 %v1115_v9  ;;  %v1119_v11 = vsel %vm1068_vm0, %v1117_v10, 0.0 }
 0x10c   :  { %1120 = vadd.xlane.f32.xlu2 %v1119_v11 }
 0x111   :  { %v1248_v62 = vpop.eup %1247 }
 0x112   :  { %v1118_v27 = vsel %vm1087_vm9, %v1248_v62, 0.0 }
 0x113   :  { %v1122_v51 = vsel %vm1068_vm0, %v1118_v27, 0.0 }
 0x114   :  { %1147 = vadd.xlane.f32.xlu2 %v1146_v13  ;;  %1123 = vadd.xlane.f32.xlu0 %v1122_v51 }
 0x167   :  { %v1145_v24 = vpop.xlane.xlu1 %1144 }
 0x168   :  { %v1151_v25 = vadd.f32 1e-06, %v1145_v24 }
 0x16a   :  { %vm1158_vm12 = vweird.f32 %v1151_v25  ;;  %v1164_v42 = vand.u32 2147483648, %v1151_v25  ;;  %v1162_v3 = vand.u32 2147483647, %v1151_v25 }
 0x16c   :  { %v1165_v47 = vor.u32 1.1754944e-38, %v1164_v42  ;;  %vm1163_vm14 = vcmp.eq.f32.partialorder %v1162_v3, 8.507059e+37 }
 0x17f   :  { %v1121_v55 = vpop.xlane.xlu2 %1120 }
 0x180   :  { %1249 = vlog2.f32 %v1121_v55 }
 0x186   :  { %v1250_v14 = vpop.eup %1249 }
 0x187   :  { %v1126_v15 = vmul.f32 0.6931472, %v1250_v14  ;;  %v1124_v20 = vpop.xlane.xlu0 %1123  ;;  %v1148_v18 = vpop.xlane.xlu2 %1147 }
 0x188   :  { %1251 = vlog2.f32 %v1124_v20  ;;  %v1152_v61 = vadd.f32 1e-06, %v1148_v18 }
 0x189   :  { %v1129_v21 = vsub.f32 %v1075_v4, %v1126_v15  ;;  %1253 = vrcp.f32 %v1151_v25 }
 0x18a   :  { %1255 = vrcp.f32 %v1152_v61  ;;  %v1179_v54 = vand.u32 2147483648, %v1152_v61  ;;  %vm1173_vm2 = vweird.f32 %v1152_v61  ;;  %v1177_v40 = vand.u32 2147483647, %v1152_v61 }
 0x18b   :  { %v1131_v60 = vsel %vm1602_vm5, %v1129_v21, 0.0 }
 0x18c   :  { %v1133_v56 = vsel %vm1068_vm0, %v1131_v60, 0.0  ;;  %v1180_v44 = vor.u32 1.1754944e-38, %v1179_v54  ;;  %vm1178_vm4 = vcmp.eq.f32.partialorder %v1177_v40, 8.507059e+37 }
 0x18d   :  { %1134 = vadd.xlane.f32.xlu2 %v1133_v56 }
 0x18e   :  { %v1252_v26 = vpop.eup %1251 }
 0x18f   :  { %v1128_v8 = vmul.f32 0.6931472, %v1252_v26  ;;  %v1254_v36 = vpop.eup %1253 }
 0x190   :  { %v1154_v38 = vmul.f32 %v1254_v36, %v1151_v25  ;;  %v1256_v30 = vpop.eup %1255  ;;  %vm1159_vm13 = vweird.f32 %v1254_v36 }
 0x191   :  { %v1130_v17 = vsub.f32 %v1076_v57, %v1128_v8  ;;  %v1169_v41 = vmul.f32 %v1256_v30, %v1152_v61  ;;  %vm1174_vm15 = vweird.f32 %v1256_v30 }
 0x192   :  { %v1155_v29 = vsub.f32 1.0, %v1154_v38  ;;  %vm1175_vm3 = vmor %vm1173_vm2, %vm1174_vm15 }
 0x193   :  { %v1132_v7 = vsel %vm1622_vm11, %v1130_v17, 0.0  ;;  %v1170_v43 = vsub.f32 1.0, %v1169_v41 }
 0x194   :  { %v1136_v23 = vsel %vm1068_vm0, %v1132_v7, 0.0  ;;  %v1156_v32 = vmul.f32 %v1254_v36, %v1155_v29  ;;  %vm1160_vm0 = vmor %vm1158_vm12, %vm1159_vm13 }
 0x195   :  { %1137 = vadd.xlane.f32.xlu2 %v1136_v23  ;;  %v1171_v45 = vmul.f32 %v1256_v30, %v1170_v43 }
 0x196   :  { %v1157_v19 = vadd.f32 %v1254_v36, %v1156_v32 }
 0x197   :  { %v1172_v52 = vadd.f32 %v1256_v30, %v1171_v45 }
 0x198   :  { %v1161_v34 = vsel %vm1160_vm0, %v1254_v36, %v1157_v19 }
 0x199   :  { %v1166_v49 = vsel %vm1163_vm14, %v1165_v47, %v1161_v34  ;;  %v1176_v2 = vsel %vm1175_vm3, %v1256_v30, %v1172_v52 }
 0x19a   :  { %v1181_v4 = vsel %vm1178_vm4, %v1180_v44, %v1176_v2 }
 0x200   :  { %v1135_v48 = vpop.xlane.xlu2 %1134 }
 0x201   :  { %v1149_v22 = vadd.f32 1e-06, %v1135_v48 }
 0x203   :  { %v1167_v50 = vmul.f32 %v1166_v49, %v1149_v22 }
 0x205   :  { %v1183_v39 = vmul.f32 -1.0, %v1167_v50 }
 0x207   :  { %1186 = vst.msk [vmem:[%s1651_s4] sm:$0xff] %vm1185_vm1, %v1183_v39 }
 0x208   :  { %v1138_v31 = vpop.xlane.xlu2 %1137 }
 0x209   :  { %v1150_v58 = vadd.f32 1e-06, %v1138_v31 }
 0x20b   :  { %v1182_v16 = vmul.f32 %v1181_v4, %v1150_v58 }
 0x20d   :  { %v1184_v59 = vmul.f32 -1.0, %v1182_v16 }
 0x20f   :  { %1187 = vst.msk [vmem:[%s1651_s4 + $0x8] sm:$0xff] %vm1185_vm1, %v1184_v59 }

</bundles_post_ra>
